<compile_context>
chip_gen: v7x
topology: tpu7x:2x2x1
jax: 0.10.0
libtpu: 0.0.40
codegen_flags: <defaults>
</compile_context>

<pallas_src>
import jax
import jax.numpy as jnp
from jax.experimental import pallas as pl
from jax.experimental.pallas import tpu as pltpu


def _round_up(x, m):
    return ((x + m - 1) // m) * m


_VMEM_LIMIT_BYTES = 48 * 1024 * 1024   # safe on v5e/v6e (128 MiB) and v7x (64 MiB)
_VMEM_BUDGET_BYTES = 40 * 1024 * 1024  # sizing budget, with headroom under the limit


# ---------------------------------------------------------------------------
# Kernel: one grid step == one batch tile of `tile` rows.
#   enc_ref : (tile * S, E) bf16   flattened encoder outputs
#   hid_ref : (tile, Hd)    bf16   decoder hidden state
#   we_ref  : (E, A)        bf16   encoder half of the attention Linear weight
#   wh_ref  : (Hd, A)       bf16   hidden  half of the attention Linear weight
#   ba_ref  : (1, A)        f32    attention Linear bias
#   v_ref   : (1, A)        f32    scoring vector (nn.Linear(A, 1).weight)
#   out_ref : (S, tile)     f32    transposed attention weights
# ---------------------------------------------------------------------------
def _attention_kernel(enc_ref, hid_ref, we_ref, wh_ref, ba_ref, v_ref, out_ref):
    tb = hid_ref.shape[0]
    s = enc_ref.shape[0] // tb
    a = we_ref.shape[1]

    # Key projection: ONE MXU matmul with M = tile * S (bf16 x bf16 -> f32).
    enc_term = jnp.dot(enc_ref[...], we_ref[...],
                       preferred_element_type=jnp.float32)            # (tb*s, a)

    # Query projection once per batch row; bias folded in here so it is a
    # (tb, a) add instead of a (tb, s, a) broadcast add.
    h_term = jnp.dot(hid_ref[...], wh_ref[...],
                     preferred_element_type=jnp.float32) + ba_ref[...]  # (tb, a)

    # Elementwise math in f32 (v5e has no bf16 VPU/EUP path).
    energies = jnp.tanh(enc_term.reshape(tb, s, a) + h_term[:, None, :])

    # Score: contract the attention (lane) axis against the v row vector.
    scores = jnp.sum(energies * v_ref[...][None], axis=-1)            # (tb, s)

    # Numerically-stable softmax over the source axis, exact normalization.
    m = jnp.max(scores, axis=-1, keepdims=True)
    e = jnp.exp(scores - m)
    denom = jnp.sum(e, axis=-1, keepdims=True)
    att = e * (1.0 / denom)                                           # (tb, s)

    # Store transposed: lane axis = batch tile -> dense, unmasked stores
    # whenever tile >= 128.  The wrapper transposes back.
    out_ref[...] = att.T


def _choose_batch_tile(batch, src_len, enc_dim, att_dim):
    """Largest batch tile whose per-step working set fits the VMEM budget."""
    bytes_per_row = (
        2 * src_len * enc_dim * 2        # bf16 encoder block, double-buffered
        + 2 * src_len * att_dim * 4      # f32 enc_term / energies
        + 4 * src_len * 4                # scores / exp / output slabs
        + 8 * att_dim                    # hidden row, query term
    )
    cap = max(8, _VMEM_BUDGET_BYTES // max(bytes_per_row, 1))
    b8 = _round_up(batch, 8)
    if b8 <= cap:
        # Whole (padded) batch fits in one tile.  If large, split into two
        # equal 128-aligned tiles so both v7x TensorCores get work.
        if b8 >= 256 and (b8 // 2) % 128 == 0:
            return b8 // 2
        return b8
    # Multi-tile: keep the tile a multiple of 128 so the transposed output's
    # lane axis is dense and the MXU M dimension is tile-aligned.
    tile = max(128, (cap // 128) * 128)
    # TODO(synk): for very long src_len the right fix is an S-tiled online
    # softmax (second "arbitrary" grid axis) rather than smaller batch tiles.
    return min(tile, 1024)


def attention_forward(params, encoder_outputs, decoder_hidden):
    """encoder_outputs: (B, S, 2*He) f32, decoder_hidden: (B, Hd) f32 -> (B, S)."""
    batch, src_len, enc_dim = encoder_outputs.shape
    hid_dim = decoder_hidden.shape[-1]
    att_dim = params['w_hid'].shape[-1]

    tile = _choose_batch_tile(batch, src_len, enc_dim, att_dim)
    bp = _round_up(batch, tile)
    if bp != batch:
        pad = bp - batch
        encoder_outputs = jnp.pad(encoder_outputs, ((0, pad), (0, 0), (0, 0)))
        decoder_hidden = jnp.pad(decoder_hidden, ((0, pad), (0, 0)))

    # Host-side flatten (pure layout plumbing) + bf16 cast of MXU operands.
    enc_flat = encoder_outputs.reshape(bp * src_len, enc_dim).astype(jnp.bfloat16)
    hid = decoder_hidden.astype(jnp.bfloat16)
    w_enc = params['w_enc'].astype(jnp.bfloat16)
    w_hid = params['w_hid'].astype(jnp.bfloat16)
    b_attn = params['b_attn'].astype(jnp.float32)
    v = params['v'].astype(jnp.float32)

    grid = bp // tile

    out_t = pl.pallas_call(
        _attention_kernel,
        out_shape=jax.ShapeDtypeStruct((src_len, bp), jnp.float32),
        grid_spec=pltpu.PrefetchScalarGridSpec(
            num_scalar_prefetch=0,
            grid=(grid,),
            in_specs=[
                pl.BlockSpec((tile * src_len, enc_dim), lambda b: (b, 0)),
                pl.BlockSpec((tile, hid_dim), lambda b: (b, 0)),
                pl.BlockSpec((enc_dim, att_dim), lambda b: (0, 0)),   # resident
                pl.BlockSpec((hid_dim, att_dim), lambda b: (0, 0)),   # resident
                pl.BlockSpec((1, att_dim), lambda b: (0, 0)),         # resident
                pl.BlockSpec((1, att_dim), lambda b: (0, 0)),         # resident
            ],
            out_specs=pl.BlockSpec((src_len, tile), lambda b: (0, b)),
        ),
        compiler_params=pltpu.CompilerParams(
            dimension_semantics=("parallel",),
            vmem_limit_bytes=_VMEM_LIMIT_BYTES,
        ),
    )(enc_flat, hid, w_enc, w_hid, b_attn, v)

    # Padded batch rows hold a uniform softmax; they are sliced off here and
    # must not be consumed before this slice.
    return out_t.T[:batch]


# ---------------------------------------------------------------------------
# Pure-JAX references (used only for the correctness assertions).
# ---------------------------------------------------------------------------
def attention_reference(params, encoder_outputs, decoder_hidden):
    """Exact f32 mirror of the PyTorch forward (repeat + concat + Linear + v)."""
    b, s, _ = encoder_outputs.shape
    hd = decoder_hidden.shape[-1]
    hid_rep = jnp.broadcast_to(decoder_hidden[:, None, :], (b, s, hd))
    cat = jnp.concatenate([encoder_outputs, hid_rep], axis=-1)
    w = jnp.concatenate([params['w_enc'], params['w_hid']], axis=0)
    energies = jnp.tanh(
        jnp.matmul(cat, w, precision=jax.lax.Precision.HIGHEST) + params['b_attn'])
    scores = jnp.sum(energies * params['v'][None, :, :], axis=-1)
    return jax.nn.softmax(scores, axis=1)


def attention_reference_bf16(params, encoder_outputs, decoder_hidden):
    """Same math with the kernel's bf16 operand rounding (tight check)."""
    p = dict(params)
    p['w_enc'] = params['w_enc'].astype(jnp.bfloat16).astype(jnp.float32)
    p['w_hid'] = params['w_hid'].astype(jnp.bfloat16).astype(jnp.float32)
    enc = encoder_outputs.astype(jnp.bfloat16).astype(jnp.float32)
    hid = decoder_hidden.astype(jnp.bfloat16).astype(jnp.float32)
    return attention_reference(p, enc, hid)


def init_params(key, encoder_hidden_dim, decoder_dim):
    e = 2 * encoder_hidden_dim
    a = decoder_dim
    k1, k2, k3, k4 = jax.random.split(key, 4)
    scale = 1.0 / jnp.sqrt(jnp.float32(e + a))
    return {
        # split of nn.Linear(2*He + Hd, Hd).weight.T along the input axis
        'w_enc': (scale * jax.random.normal(k1, (e, a))).astype(jnp.float32),
        'w_hid': (scale * jax.random.normal(k2, (a, a))).astype(jnp.float32),
        'b_attn': (scale * jax.random.normal(k3, (1, a))).astype(jnp.float32),
        # nn.Linear(Hd, 1, bias=False).weight, kept as a (1, Hd) row vector
        'v': (jax.random.normal(k4, (1, a)) / jnp.sqrt(jnp.float32(a))
              ).astype(jnp.float32),
    }


if __name__ == "__main__":
    B, S = 2, 8                 # batch, src_len
    ENC_H, DEC_H = 16, 32       # encoder_hidden_dim, decoder_dim
    E = 2 * ENC_H               # bidirectional encoder feature width

    key = jax.random.PRNGKey(0)
    k_p, k_enc, k_hid = jax.random.split(key, 3)
    params = init_params(k_p, ENC_H, DEC_H)
    encoder_outputs = jax.random.normal(k_enc, (B, S, E), dtype=jnp.float32)
    decoder_hidden = jax.random.normal(k_hid, (B, DEC_H), dtype=jnp.float32)

    attn = attention_forward(params, encoder_outputs, decoder_hidden)
    attn = jax.block_until_ready(attn)

    ref_f32 = attention_reference(params, encoder_outputs, decoder_hidden)
    ref_bf16 = attention_reference_bf16(params, encoder_outputs, decoder_hidden)

    assert attn.shape == (B, S), attn.shape
    assert bool(jnp.all(jnp.isfinite(attn)))
    # Exact-divide softmax: rows sum to 1 to f32 precision.
    assert bool(jnp.all(jnp.abs(jnp.sum(attn, axis=1) - 1.0) < 1e-4))
    # Tight: kernel matches the reference evaluated with the same bf16 operands.
    assert bool(jnp.allclose(attn, ref_bf16, rtol=1e-3, atol=1e-3)), \
        float(jnp.max(jnp.abs(attn - ref_bf16)))
    # Loose: bf16 MXU operands vs. the exact-f32 PyTorch-faithful reference.
    assert bool(jnp.allclose(attn, ref_f32, rtol=2e-2, atol=2e-2)), \
        float(jnp.max(jnp.abs(attn - ref_f32)))
    print("KERNEL_OK")
</pallas_src>

<mosaic_0001>
module attributes {stable_mosaic.version = 11 : i64} {
  func.func @_attention_kernel(%arg0: i32, %arg1: memref<64x32xbf16, #tpu.memory_space<vmem>>, %arg2: memref<8x32xbf16, #tpu.memory_space<vmem>>, %arg3: memref<32x32xbf16, #tpu.memory_space<vmem>>, %arg4: memref<32x32xbf16, #tpu.memory_space<vmem>>, %arg5: memref<1x32xf32, #tpu.memory_space<vmem>>, %arg6: memref<1x32xf32, #tpu.memory_space<vmem>>, %arg7: memref<8x8xf32, #tpu.memory_space<vmem>>) attributes {dimension_semantics = [#tpu.dimension_semantics<parallel>], iteration_bounds = array<i64: 1>, scalar_prefetch = 0 : i64, scratch_operands = 0 : i64, tpu.core_type = #tpu.core_type<tc>, window_params = [{transform_indices = @transform_0, window_bounds = array<i64: 64, 32>}, {transform_indices = @transform_1, window_bounds = array<i64: 8, 32>}, {pipeline_mode = #tpu.pipeline_mode<synchronous>, transform_indices = @transform_2, window_bounds = array<i64: 32, 32>}, {pipeline_mode = #tpu.pipeline_mode<synchronous>, transform_indices = @transform_3, window_bounds = array<i64: 32, 32>}, {pipeline_mode = #tpu.pipeline_mode<synchronous>, transform_indices = @transform_4, window_bounds = array<i64: 1, 32>}, {pipeline_mode = #tpu.pipeline_mode<synchronous>, transform_indices = @transform_5, window_bounds = array<i64: 1, 32>}, {transform_indices = @transform_6, window_bounds = array<i64: 8, 8>}]} {
    %c0 = arith.constant 0 : index
    %c0_0 = arith.constant 0 : index
    %0 = vector.load %arg1[%c0, %c0_0] : memref<64x32xbf16, #tpu.memory_space<vmem>>, vector<64x32xbf16>
    %c0_1 = arith.constant 0 : index
    %c0_2 = arith.constant 0 : index
    %1 = vector.load %arg3[%c0_1, %c0_2] : memref<32x32xbf16, #tpu.memory_space<vmem>>, vector<32x32xbf16>
    %cst = arith.constant dense<0.000000e+00> : vector<64x32xf32>
    %2 = tpu.matmul %0, %1, %cst {dimension_numbers = #tpu.dot_dimension_numbers<[1], [0], [0], [1], [0, 0, 1, 1], [], []>} : vector<64x32xbf16>, vector<32x32xbf16>, vector<64x32xf32> -> vector<64x32xf32>
    %c0_3 = arith.constant 0 : index
    %c0_4 = arith.constant 0 : index
    %3 = vector.load %arg2[%c0_3, %c0_4] : memref<8x32xbf16, #tpu.memory_space<vmem>>, vector<8x32xbf16>
    %c0_5 = arith.constant 0 : index
    %c0_6 = arith.constant 0 : index
    %4 = vector.load %arg4[%c0_5, %c0_6] : memref<32x32xbf16, #tpu.memory_space<vmem>>, vector<32x32xbf16>
    %cst_7 = arith.constant dense<0.000000e+00> : vector<8x32xf32>
    %5 = tpu.matmul %3, %4, %cst_7 {dimension_numbers = #tpu.dot_dimension_numbers<[1], [0], [0], [1], [0, 0, 1, 1], [], []>} : vector<8x32xbf16>, vector<32x32xbf16>, vector<8x32xf32> -> vector<8x32xf32>
    %c0_8 = arith.constant 0 : index
    %c0_9 = arith.constant 0 : index
    %6 = vector.load %arg5[%c0_8, %c0_9] : memref<1x32xf32, #tpu.memory_space<vmem>>, vector<1x32xf32>
    %7 = vector.broadcast %6 : vector<1x32xf32> to vector<8x32xf32>
    %8 = arith.addf %5, %7 : vector<8x32xf32>
    %9 = vector.shape_cast %2 : vector<64x32xf32> to vector<8x8x32xf32>
    %10 = vector.shape_cast %8 : vector<8x32xf32> to vector<8x1x32xf32>
    %11 = vector.broadcast %10 : vector<8x1x32xf32> to vector<8x8x32xf32>
    %12 = arith.addf %9, %11 : vector<8x8x32xf32>
    %13 = math.tanh %12 : vector<8x8x32xf32>
    %c0_10 = arith.constant 0 : index
    %c0_11 = arith.constant 0 : index
    %14 = vector.load %arg6[%c0_10, %c0_11] : memref<1x32xf32, #tpu.memory_space<vmem>>, vector<1x32xf32>
    %15 = vector.shape_cast %14 : vector<1x32xf32> to vector<1x1x32xf32>
    %16 = vector.broadcast %15 : vector<1x1x32xf32> to vector<8x8x32xf32>
    %17 = arith.mulf %13, %16 : vector<8x8x32xf32>
    %cst_12 = arith.constant dense<0.000000e+00> : vector<8x8xf32>
    %18 = vector.multi_reduction <add>, %17, %cst_12 [2] : vector<8x8x32xf32> to vector<8x8xf32>
    %cst_13 = arith.constant dense<0xFF800000> : vector<8xf32>
    %19 = vector.multi_reduction <maximumf>, %18, %cst_13 [1] : vector<8x8xf32> to vector<8xf32>
    %20 = vector.shape_cast %19 : vector<8xf32> to vector<8x1xf32>
    %21 = vector.broadcast %20 : vector<8x1xf32> to vector<8x8xf32>
    %22 = arith.subf %18, %21 : vector<8x8xf32>
    %23 = math.exp %22 : vector<8x8xf32>
    %cst_14 = arith.constant dense<0.000000e+00> : vector<8xf32>
    %24 = vector.multi_reduction <add>, %23, %cst_14 [1] : vector<8x8xf32> to vector<8xf32>
    %25 = vector.shape_cast %24 : vector<8xf32> to vector<8x1xf32>
    %cst_15 = arith.constant 1.000000e+00 : f32
    %26 = vector.broadcast %cst_15 : f32 to vector<8x1xf32>
    %27 = arith.divf %26, %25 : vector<8x1xf32>
    %28 = vector.broadcast %27 : vector<8x1xf32> to vector<8x8xf32>
    %29 = arith.mulf %23, %28 : vector<8x8xf32>
    %30 = tpu.transpose %29, [1, 0] : vector<8x8xf32> -> vector<8x8xf32>
    %c0_16 = arith.constant 0 : index
    %c0_17 = arith.constant 0 : index
    %31 = vector.load %arg7[%c0_16, %c0_17] : memref<8x8xf32, #tpu.memory_space<vmem>>, vector<8x8xf32>
    tpu.vector_store %arg7[%c0_16, %c0_17], %30 {strides = array<i32>} : memref<8x8xf32, #tpu.memory_space<vmem>>, vector<8x8xf32>,
    return
  }
  func.func @transform_0(%arg0: i32) -> (i32, i32) {
    %c0_i32 = arith.constant 0 : i32
    %c0_i32_0 = arith.constant 0 : i32
    return %arg0, %c0_i32 : i32, i32
  }
  func.func @transform_1(%arg0: i32) -> (i32, i32) {
    %c0_i32 = arith.constant 0 : i32
    %c0_i32_0 = arith.constant 0 : i32
    return %arg0, %c0_i32 : i32, i32
  }
  func.func @transform_2(%arg0: i32) -> (i32, i32) {
    %c0_i32 = arith.constant 0 : i32
    %c0_i32_0 = arith.constant 0 : i32
    %c0_i32_1 = arith.constant 0 : i32
    return %c0_i32, %c0_i32_0 : i32, i32
  }
  func.func @transform_3(%arg0: i32) -> (i32, i32) {
    %c0_i32 = arith.constant 0 : i32
    %c0_i32_0 = arith.constant 0 : i32
    %c0_i32_1 = arith.constant 0 : i32
    return %c0_i32, %c0_i32_0 : i32, i32
  }
  func.func @transform_4(%arg0: i32) -> (i32, i32) {
    %c0_i32 = arith.constant 0 : i32
    %c0_i32_0 = arith.constant 0 : i32
    %c0_i32_1 = arith.constant 0 : i32
    return %c0_i32, %c0_i32_0 : i32, i32
  }
  func.func @transform_5(%arg0: i32) -> (i32, i32) {
    %c0_i32 = arith.constant 0 : i32
    %c0_i32_0 = arith.constant 0 : i32
    %c0_i32_1 = arith.constant 0 : i32
    return %c0_i32, %c0_i32_0 : i32, i32
  }
  func.func @transform_6(%arg0: i32) -> (i32, i32) {
    %c0_i32 = arith.constant 0 : i32
    %c0_i32_0 = arith.constant 0 : i32
    return %c0_i32, %arg0 : i32, i32
  }
}

</mosaic_0001>

<bundles_post_ra>
// kernel: tpu_custom_call.1
= control target key start
LH: loop header
LB: loop body
LE: loop exit
PB: predicated region body
PF: predicated region fallthrough
CT: control target
= control target key end

     0   :  { %v847_v1 = vmov 0.0   ;;  %vm848_vm0 = vmmov 0   ;;  %vm69_vm1 = vcmask 261120   ;;  %s1049_s0 = inlined_call_operand.vmem [shape: bf16[64,32], index: 0, kind: input, shape index: {}]   ;;  %s1050_s1 = inlined_call_operand.vmem [shape: bf16[8,32], index: 1, kind: input, shape index: {}]   ;;  %s1051_s2 = inlined_call_operand.vmem [shape: bf16[32,32], index: 2, kind: input, shape index: {}]   ;;  %s1052_s3 = inlined_call_operand.vmem [shape: bf16[32,32], index: 3, kind: input, shape index: {}]   ;;  %s1053_s4 = inlined_call_operand.vmem [shape: f32[1,32], index: 4, kind: input, shape index: {}]   ;;  %s1054_s5 = inlined_call_operand.vmem [shape: f32[1,32], index: 5, kind: input, shape index: {}]   ;;  %s1055_s6 = inlined_call_operand.hbm [shape: f32[8,8], index: 6, kind: output, shape index: {}]  }
   0x1   :  { %v781_v0 = vld [vmem:[%s1051_s2] sm:$0xff]   ;;  %766 = vmatprep.subr.bf16.mxu1 %v847_v1  ;;  %v783_v3 = vld [vmem:[%s1051_s2 + $0x8] sm:$0xff]   ;;  %770 = vmatprep.mubr.msk.bf16.mxu1 %vm848_vm0, %v847_v1  ;;  %v787_v8 = vld [vmem:[%s1049_s0 + $0x10] sm:$0xff]  }
   0x2   :  { %v782_v2 = vld [vmem:[%s1052_s3] sm:$0xff]   ;;  %754 = vmatprep.subr.bf16.mxu0 %v781_v0  ;;  %v784_v4 = vld [vmem:[%s1052_s3 + $0x8] sm:$0xff]  }
   0x3   :  { %767 = vmatpush3.bf16.msra.mxu1 %v782_v2  ;;  %755 = vmatpush3.bf16.msra.mxu0 %v781_v0  ;;  %v785_v5 = vld [vmem:[%s1049_s0] sm:$0xff]   ;;  %v786_v7 = vld [vmem:[%s1049_s0 + $0x8] sm:$0xff]  }
   0x4   :  { %768 = vmatprep.subr.bf16.mxu1 %v847_v1  ;;  %756 = vmatprep.subr.bf16.mxu0 %v783_v3  ;;  %v147_v6 = vld [vmem:[%s1050_s1] sm:$0xf] }
   0x5   :  { %758 = vmatprep.mubr.msk.bf16.mxu0 %vm69_vm1, %v785_v5 }
   0x7   :  { %769 = vmatpush3.bf16.msra.mxu1 %v784_v4  ;;  %757 = vmatpush3.bf16.msra.mxu0 %v783_v3 }
   0x8   :  { %11 = vsyncpa [#allocation3], 0  ;;  %v788_v9 = vld [vmem:[%s1049_s0 + $0x18] sm:$0xff]   ;;  %v849_v10 = vmov 1966171168   ;;  %v219_v12 = vlaneseq  ;;  %vm401_vm2 = vcmask 1041409  }
   0x9   :  { %v217_v11 = vunpack.c.l.s4 %v849_v10  ;;  %v740_v15 = vld [vmem:[%s1053_s4] ss:$0 sm:$0xff]  ;;  %vm403_vm3 = vcmask 1042434   ;;  %vm405_vm4 = vcmask 1043459   ;;  %vm407_vm5 = vcmask 1044484  }
   0xa   :  { %771 = vmatmul.mubr.msk.bf16.vlgmr.msra.gmra.mrb[0].mxu1 %vm69_vm1, %v147_v6  ;;  %759 = vmatmul.mubr.msk.bf16.vlgmr.msra.gmra.mrb[0].mxu0 %vm69_vm1, %v786_v7  ;;  %v920_v14 = vshrl.u32 %v219_v12, 7  ;;  %v744_v60 = vld [vmem:[%s1054_s5] ss:$0 sm:$0xff]  ;;  %vm409_vm6 = vcmask 1045509   ;;  %vm411_vm7 = vcmask 1046534   ;;  %vm413_vm8 = vcmask 1047559  }
   0xb   :  { %762 = vmatprep.mubr.msk.bf16.mxu0 %vm69_vm1, %v787_v8  ;;  %v218_v13 = vunpack.c.0.s8 %v217_v11  ;;  %vm416_vm9 = vcmask 64512   ;;  %s851_s5 = smov [#allocation2]  }
   0xc   :  { %v927_v27 = vsub.s32 0, %v920_v14  ;;  %s722_s14 = sshll.u32 %s851_s5, 4  ;;  %s723_s14 = int_to_ptr.vmem [resolvable:$true] %s722_s14 }
   0xd   :  { %v221_v16 = vsub.s32 %v218_v13, %v920_v14  ;;  %s823_s15 = scalar_lea.vmem %s723_s14, 128  ;;  %p828_p1 = scmp.lt.s32.totalorder %s723_s14, %s723_s14 }
   0xe   :  { %p824_p0 = scmp.ne.s32.totalorder %s723_s14, %s823_s15  ;;  %p829_p2 = scmp.lt.s32.totalorder %s823_s15, %s823_s15 }
  0x10   :  { %p830_p3 = por %p829_p2, %p828_p1 }
  0x12   :  { %763 = vmatmul.mubr.msk.bf16.gmra.mrb[4].mxu0 %vm69_vm1, %v788_v9  ;;  %p831_p4 = pnand %p830_p3, %p824_p0 }
  0xdd   :  { %v208_v17 = vpop.f32.mrb[0].mxu1  ;;  %v760_v18 = vpop.f32.mrb[0].mxu0 }
  0xde   :  { %v209_v19 = vadd.f32 %v740_v15, %v208_v17  ;;  %v772_v20 = vpop.f32.mrb[1].mxu1  ;;  %v116_v21 = vpop.f32.mrb[1].mxu0 }
  0xdf   :  { %v211_v22 = vpop.f32.mrb[2].mxu1  ;;  %v761_v23 = vpop.f32.mrb[2].mxu0 }
  0xe0   :  { %v215_v24 = vcombine.high %v209_v19, %v209_v19  ;;  %v222_v25 = vrot.slane %v209_v19, %v221_v16  ;;  %v773_v26 = vpop.f32.mrb[3].mxu1  ;;  %v119_v28 = vpop.f32.mrb[3].mxu0 }
  0xe2   :  { %v229_v29 = vrot.slane %v215_v24, %v221_v16  ;;  %v230_v30 = vcombine.high %v222_v25, %v222_v25  ;;  %v238_v31 = vrot.slane %v222_v25, %v221_v16 }
  0xe4   :  { %v231_v32 = vcombine.high %v229_v29, %v229_v29  ;;  %v260_v33 = vcombine.high %v238_v31, %v238_v31  ;;  %v267_v34 = vrot.slane %v238_v31, %v927_v27  ;;  %v252_v35 = vrot.slane %v230_v30, %v221_v16 }
  0xe5   :  { %v764_v36 = vpop.f32.mrb[4].mxu0  ;;  %v245_v37 = vrot.slane %v229_v29, %v221_v16 }
  0xe6   :  { %v275_v38 = vrot.slane %v260_v33, %v927_v27  ;;  %v304_v39 = vadd.f32 %v267_v34, %v116_v21  ;;  %v262_v40 = vcombine.high %v252_v35, %v252_v35  ;;  %v271_v41 = vrot.slane %v252_v35, %v927_v27  ;;  %v132_v42 = vpop.f32.mrb[5].mxu0 }
  0xe7   :  { %v261_v43 = vcombine.high %v245_v37, %v245_v37  ;;  %v283_v44 = vrot.slane %v245_v37, %v927_v27  ;;  %v765_v45 = vpop.f32.mrb[6].mxu0  ;;  %v259_v46 = vrot.slane %v231_v32, %v221_v16 }
  0xe8   :  { %v306_v47 = vadd.f32 %v760_v18, %v275_v38  ;;  %789 = vtanh.f32 %v304_v39  ;;  %v279_v48 = vrot.slane %v262_v40, %v927_v27  ;;  %v305_v49 = vadd.f32 %v271_v41, %v119_v28  ;;  %v135_v50 = vpop.f32.mrb[7].mxu0 }
  0xe9   :  { %v291_v51 = vrot.slane %v261_v43, %v927_v27  ;;  %v308_v52 = vadd.f32 %v283_v44, %v132_v42  ;;  %v263_v53 = vcombine.high %v259_v46, %v259_v46  ;;  %v287_v54 = vrot.slane %v259_v46, %v927_v27 }
  0xea   :  { %791 = vtanh.f32 %v306_v47  ;;  %v307_v55 = vadd.f32 %v761_v23, %v279_v48  ;;  %v368_v23 = vand.u32 127, %v219_v12 }
  0xeb   :  { %793 = vtanh.f32 %v305_v49  ;;  %v310_v56 = vadd.f32 %v764_v36, %v291_v51  ;;  %v295_v57 = vrot.slane %v263_v53, %v927_v27  ;;  %v309_v58 = vadd.f32 %v287_v54, %v135_v50 }
  0xec   :  { %795 = vtanh.f32 %v307_v55  ;;  %v950_v25 = vsub.s32 %v368_v23, %v920_v14  ;;  %v850_v49 = vmov 0   ;;  %v427_v50 = vsub.s32 1, %v920_v14 }
  0xed   :  { %v311_v59 = vadd.f32 %v765_v45, %v295_v57  ;;  %797 = vtanh.f32 %v308_v52  ;;  %780 = vset.pattern.permute.xlu0 %v850_v49  ;;  %779 = vset.pattern.permute.xlu1 %v850_v49  ;;  %v431_v51 = vsub.s32 2, %v920_v14  ;;  %v435_v52 = vsub.s32 3, %v920_v14 }
  0xee   :  { %799 = vtanh.f32 %v310_v56  ;;  %v439_v57 = vsub.s32 4, %v920_v14 }
  0xef   :  { %801 = vtanh.f32 %v309_v58 }
  0xf0   :  { %803 = vtanh.f32 %v311_v59 }
  0xf2   :  { %v790_v61 = vpop.eup %789 }
  0xf3   :  { %v327_v62 = vmul.f32 %v790_v61, %v744_v60 }
  0xf4   :  { %v792_v63 = vpop.eup %791 }
  0xf5   :  { %v794_v0 = vpop.eup %793  ;;  %v335_v1 = vsel %vm69_vm1, %v327_v62, 0.0  ;;  %v329_v2 = vmul.f32 %v792_v63, %v744_v60 }
  0xf6   :  { %v796_v3 = vpop.eup %795  ;;  %336 = vadd.xlane.f32.xlu0 %v335_v1  ;;  %v328_v4 = vmul.f32 %v794_v0, %v744_v60  ;;  %v443_v0 = vsub.s32 5, %v920_v14 }
  0xf7   :  { %v341_v5 = vsel %vm69_vm1, %v329_v2, 0.0  ;;  %v330_v6 = vmul.f32 %v796_v3, %v744_v60  ;;  %v798_v7 = vpop.eup %797 }
  0xf8   :  { %342 = vadd.xlane.f32.xlu1 %v341_v5  ;;  %v800_v8 = vpop.eup %799  ;;  %v338_v9 = vsel %vm69_vm1, %v328_v4, 0.0  ;;  %v331_v10 = vmul.f32 %v798_v7, %v744_v60  ;;  %v447_v4 = vsub.s32 6, %v920_v14 }
  0xf9   :  { %v802_v11 = vpop.eup %801  ;;  %v344_v13 = vsel %vm69_vm1, %v330_v6, 0.0  ;;  %v333_v18 = vmul.f32 %v800_v8, %v744_v60  ;;  %v451_v8 = vsub.s32 7, %v920_v14 }
  0xfa   :  { %339 = vadd.xlane.f32.xlu0 %v338_v9  ;;  %v332_v15 = vmul.f32 %v802_v11, %v744_v60  ;;  %v804_v16 = vpop.eup %803  ;;  %v347_v17 = vsel %vm69_vm1, %v331_v10, 0.0 }
  0xfb   :  { %v334_v20 = vmul.f32 %v804_v16, %v744_v60  ;;  %v353_v21 = vsel %vm69_vm1, %v333_v18, 0.0 }
  0xfc   :  { %345 = vadd.xlane.f32.xlu1 %v344_v13  ;;  %v350_v19 = vsel %vm69_vm1, %v332_v15, 0.0 }
  0xfd   :  { %v356_v22 = vsel %vm69_vm1, %v334_v20, 0.0 }
  0xfe   :  { %348 = vadd.xlane.f32.xlu0 %v347_v17 }
 0x100   :  { %351 = vadd.xlane.f32.xlu1 %v350_v19 }
 0x102   :  { %354 = vadd.xlane.f32.xlu0 %v353_v21 }
 0x104   :  { %357 = vadd.xlane.f32.xlu1 %v356_v22 }
 0x183   :  { %v337_v24 = vpop.xlane.xlu0 %336 }
 0x184   :  { %v372_v29 = vrot.slane %v337_v24, %v950_v25 }
 0x185   :  { %v343_v26 = vpop.xlane.xlu1 %342 }
 0x186   :  { %v380_v31 = vrot.slane %v343_v26, %v950_v25 }
 0x187   :  { %v340_v28 = vpop.xlane.xlu0 %339 }
 0x188   :  { %v376_v30 = vrot.slane %v340_v28, %v950_v25 }
 0x189   :  { %v346_v32 = vpop.xlane.xlu1 %345 }
 0x18a   :  { %v402_v33 = vsel %vm401_vm2, %v376_v30, %v372_v29  ;;  %v384_v12 = vrot.slane %v346_v32, %v950_v25 }
 0x18b   :  { %v404_v34 = vsel %vm403_vm3, %v380_v31, %v402_v33  ;;  %v349_v35 = vpop.xlane.xlu0 %348 }
 0x18c   :  { %v406_v36 = vsel %vm405_vm4, %v384_v12, %v404_v34  ;;  %v388_v37 = vrot.slane %v349_v35, %v950_v25 }
 0x18d   :  { %v352_v38 = vpop.xlane.xlu1 %351 }
 0x18e   :  { %v408_v39 = vsel %vm407_vm5, %v388_v37, %v406_v36  ;;  %v392_v40 = vrot.slane %v352_v38, %v950_v25 }
 0x18f   :  { %v355_v41 = vpop.xlane.xlu0 %354 }
 0x190   :  { %v396_v42 = vrot.slane %v355_v41, %v950_v25  ;;  %v410_v43 = vsel %vm409_vm6, %v392_v40, %v408_v39 }
 0x191   :  { %v358_v44 = vpop.xlane.xlu1 %357 }
 0x192   :  { %v400_v45 = vrot.slane %v358_v44, %v950_v25  ;;  %v412_v46 = vsel %vm411_vm7, %v396_v42, %v410_v43 }
 0x194   :  { %v414_v47 = vsel %vm413_vm8, %v400_v45, %v412_v46 }
 0x195   :  { %v417_v48 = vsel %vm416_vm9, %v414_v47, -inf }
 0x196   :  { %418 = vmax.xlane.f32.xlu0 %v417_v48 }
 0x223   :  { %v419_v53 = vpop.xlane.xlu0 %418 }
 0x224   :  { %v424_v54 = vrot.slane %v419_v53, %v927_v27  ;;  %v428_v55 = vrot.slane %v419_v53, %v427_v50  ;;  %v432_v56 = vrot.slane %v419_v53, %v431_v51  ;;  %v436_v58 = vrot.slane %v419_v53, %v435_v52 }
 0x225   :  { %v440_v1 = vrot.slane %v419_v53, %v439_v57  ;;  %v444_v5 = vrot.slane %v419_v53, %v443_v0  ;;  %v448_v9 = vrot.slane %v419_v53, %v447_v4  ;;  %v452_v16 = vrot.slane %v419_v53, %v451_v8 }
 0x226   :  { %v461_v59 = vsub.f32 %v337_v24, %v424_v54  ;;  %v462_v60 = vsub.f32 %v340_v28, %v428_v55  ;;  %v463_v61 = vsub.f32 %v343_v26, %v432_v56  ;;  %v464_v2 = vsub.f32 %v346_v32, %v436_v58 }
 0x227   :  { %v465_v6 = vsub.f32 %v349_v35, %v440_v1  ;;  %v466_v10 = vsub.f32 %v352_v38, %v444_v5  ;;  %v467_v17 = vsub.f32 %v355_v41, %v448_v9  ;;  %v468_v20 = vsub.f32 %v358_v44, %v452_v16 }
 0x228   :  { %v469_v62 = vmul.f32 1.442695, %v461_v59  ;;  %v471_v63 = vmul.f32 1.442695, %v462_v60  ;;  %v473_v3 = vmul.f32 1.442695, %v463_v61 }
 0x229   :  { %v475_v7 = vmul.f32 1.442695, %v464_v2  ;;  %v477_v11 = vmul.f32 1.442695, %v465_v6  ;;  %v479_v18 = vmul.f32 1.442695, %v466_v10 }
 0x22a   :  { %805 = vpow2.f32 %v469_v62  ;;  %v481_v21 = vmul.f32 1.442695, %v467_v17  ;;  %v483_v23 = vmul.f32 1.442695, %v468_v20 }
 0x22b   :  { %807 = vpow2.f32 %v471_v63 }
 0x22c   :  { %809 = vpow2.f32 %v473_v3 }
 0x22d   :  { %811 = vpow2.f32 %v475_v7 }
 0x22e   :  { %813 = vpow2.f32 %v477_v11 }
 0x22f   :  { %815 = vpow2.f32 %v479_v18 }
 0x230   :  { %817 = vpow2.f32 %v481_v21 }
 0x231   :  { %819 = vpow2.f32 %v483_v23 }
 0x234   :  { %v806_v13 = vpop.eup %805 }
 0x235   :  { %v808_v15 = vpop.eup %807  ;;  %494 = vperm.xlu1 %779, %v806_v13  }
 0x236   :  { %497 = vperm.xlu0 %780, %v808_v15   ;;  %v810_v19 = vpop.eup %809 }
 0x237   :  { %v812_v22 = vpop.eup %811 }
 0x238   :  { %v814_v24 = vpop.eup %813 }
 0x239   :  { %500 = vperm.xlu1 %779, %v810_v19   ;;  %v816_v26 = vpop.eup %815 }
 0x23a   :  { %v818_v28 = vpop.eup %817 }
 0x23b   :  { %v820_v29 = vpop.eup %819 }
 0x23d   :  { %503 = vperm.xlu1 %779, %v812_v22  }
 0x241   :  { %506 = vperm.xlu1 %779, %v814_v24  }
 0x245   :  { %509 = vperm.xlu1 %779, %v816_v26  }
 0x249   :  { %512 = vperm.xlu1 %779, %v818_v28  }
 0x24d   :  { %515 = vperm.xlu1 %779, %v820_v29  }
 0x2b4   :  { %v495_v30 = vpop.permute.xlu1 %494 }
 0x2b5   :  { %v498_v12 = vpop.permute.xlu0 %497  ;;  %v520_v36 = vrot.slane %v495_v30, %v950_v25 }
 0x2b6   :  { %v524_v35 = vrot.slane %v498_v12, %v950_v25 }
 0x2b8   :  { %v501_v31 = vpop.permute.xlu1 %500  ;;  %v549_v41 = vsel %vm401_vm2, %v524_v35, %v520_v36 }
 0x2b9   :  { %v528_v37 = vrot.slane %v501_v31, %v950_v25 }
 0x2bb   :  { %v550_v43 = vsel %vm403_vm3, %v528_v37, %v549_v41 }
 0x2bc   :  { %v504_v32 = vpop.permute.xlu1 %503 }
 0x2bd   :  { %v532_v38 = vrot.slane %v504_v32, %v950_v25 }
 0x2bf   :  { %v551_v45 = vsel %vm405_vm4, %v532_v38, %v550_v43 }
 0x2c0   :  { %v507_v33 = vpop.permute.xlu1 %506 }
 0x2c1   :  { %v536_v39 = vrot.slane %v507_v33, %v950_v25 }
 0x2c3   :  { %v552_v46 = vsel %vm407_vm5, %v536_v39, %v551_v45 }
 0x2c4   :  { %v510_v34 = vpop.permute.xlu1 %509 }
 0x2c5   :  { %v540_v42 = vrot.slane %v510_v34, %v950_v25 }
 0x2c7   :  { %v553_v48 = vsel %vm409_vm6, %v540_v42, %v552_v46 }
 0x2c8   :  { %v513_v40 = vpop.permute.xlu1 %512 }
 0x2c9   :  { %v544_v44 = vrot.slane %v513_v40, %v950_v25 }
 0x2cb   :  { %v554_v53 = vsel %vm411_vm7, %v544_v44, %v553_v48 }
 0x2cc   :  { %v516_v47 = vpop.permute.xlu1 %515 }
 0x2cd   :  { %v548_v49 = vrot.slane %v516_v47, %v950_v25 }
 0x2cf   :  { %v555_v54 = vsel %vm413_vm8, %v548_v49, %v554_v53 }
 0x2d0   :  { %v557_v55 = vsel %vm416_vm9, %v555_v54, 0.0 }
 0x2d1   :  { %558 = vadd.xlane.f32.xlu1 %v557_v55 }
 0x35e   :  { %v559_v56 = vpop.xlane.xlu1 %558 }
 0x35f   :  { %821 = vrcp.f32 %v559_v56 }
 0x369   :  { %v822_v58 = vpop.eup %821 }
 0x36a   :  { %v566_v59 = vrot.slane %v822_v58, %v927_v27  ;;  %v570_v61 = vrot.slane %v822_v58, %v427_v50  ;;  %v574_v63 = vrot.slane %v822_v58, %v431_v51  ;;  %v578_v2 = vrot.slane %v822_v58, %v435_v52 }
 0x36b   :  { %v582_v5 = vrot.slane %v822_v58, %v439_v57  ;;  %v586_v50 = vrot.slane %v822_v58, %v443_v0  ;;  %v590_v51 = vrot.slane %v822_v58, %v447_v4  ;;  %v594_v52 = vrot.slane %v822_v58, %v451_v8 }
 0x36c   :  { %v603_v60 = vmul.f32 %v806_v13, %v566_v59  ;;  %v604_v62 = vmul.f32 %v808_v15, %v570_v61  ;;  %v605_v1 = vmul.f32 %v810_v19, %v574_v63  ;;  %v606_v3 = vmul.f32 %v812_v22, %v578_v2 }
 0x36d   :  { %v607_v27 = vmul.f32 %v814_v24, %v582_v5  ;;  %v608_v6 = vmul.f32 %v816_v26, %v586_v50  ;;  %v609_v7 = vmul.f32 %v818_v28, %v590_v51  ;;  %v610_v9 = vmul.f32 %v820_v29, %v594_v52 }
 0x36e   :  { %620 = vperm.xlu0 %780, %v603_v60  }
 0x372   :  { %623 = vperm.xlu0 %780, %v604_v62  }
 0x376   :  { %626 = vperm.xlu0 %780, %v605_v1  }
 0x37a   :  { %629 = vperm.xlu0 %780, %v606_v3  }
 0x37e   :  { %632 = vperm.xlu0 %780, %v607_v27  }
 0x382   :  { %635 = vperm.xlu0 %780, %v608_v6  }
 0x386   :  { %638 = vperm.xlu0 %780, %v609_v7  }
 0x38a   :  { %641 = vperm.xlu0 %780, %v610_v9  }
 0x3ed   :  { %v621_v10 = vpop.permute.xlu0 %620 }
 0x3ee   :  { %v646_v4 = vrot.slane %v621_v10, %v950_v25 }
 0x3f1   :  { %v624_v57 = vpop.permute.xlu0 %623 }
 0x3f2   :  { %v650_v0 = vrot.slane %v624_v57, %v950_v25 }
 0x3f4   :  { %v675_v19 = vsel %vm401_vm2, %v650_v0, %v646_v4 }
 0x3f5   :  { %v627_v11 = vpop.permute.xlu0 %626 }
 0x3f6   :  { %v654_v17 = vrot.slane %v627_v11, %v950_v25 }
 0x3f8   :  { %v676_v21 = vsel %vm403_vm3, %v654_v17, %v675_v19 }
 0x3f9   :  { %v630_v13 = vpop.permute.xlu0 %629 }
 0x3fa   :  { %v658_v18 = vrot.slane %v630_v13, %v950_v25 }
 0x3fc   :  { %v677_v23 = vsel %vm405_vm4, %v658_v18, %v676_v21 }
 0x3fd   :  { %v633_v15 = vpop.permute.xlu0 %632 }
 0x3fe   :  { %v662_v14 = vrot.slane %v633_v15, %v950_v25 }
 0x400   :  { %v678_v24 = vsel %vm407_vm5, %v662_v14, %v677_v23 }
 0x401   :  { %v636_v16 = vpop.permute.xlu0 %635 }
 0x402   :  { %v666_v20 = vrot.slane %v636_v16, %v950_v25 }
 0x404   :  { %v679_v28 = vsel %vm409_vm6, %v666_v20, %v678_v24 }
 0x405   :  { %v639_v8 = vpop.permute.xlu0 %638 }
 0x406   :  { %v670_v22 = vrot.slane %v639_v8, %v950_v25 }
 0x408   :  { %v680_v30 = vsel %vm411_vm7, %v670_v22, %v679_v28 }
 0x409   :  { %v642_v26 = vpop.permute.xlu0 %641 }
 0x40a   :  { %v674_v29 = vrot.slane %v642_v26, %v950_v25 }
 0x40c   :  { %v681_v31 = vsel %vm413_vm8, %v674_v29, %v680_v30 }
 0x40d   :  { %683 = vxpose.xlu1.b32.start.end [1/1] (short) (narrow) %v681_v31, 8 }
 0x48d   :  { %v699_v32 = vpop.trf.xlu1 }
 0x48e   :  { %715 = vst.msk [vmem:[#allocation2] sm:$0xff] %vm416_vm9, %v699_v32 }
 0x48f   :  { %834 = shalt.err (!%p831_p4)
}
 0x490   :  { %s835_s18 = scalar_lea.hbm %s1055_s6, 128 }
 0x491   :  { %p836_p5 = scmp.ne.s32.totalorder %s1055_s6, %s835_s18  ;;  %p839_p6 = scmp.lt.u32.totalorder %s835_s18, %s1055_s6 }
 0x493   :  { %p841_p7 = pnand %p839_p6, %p836_p5 }
 0x495   :  { %844 = shalt.err (!%p841_p7)
}
 0x496   :  { %725 = dma.vmem_to_hbm [thread:$0]  %s723_s14, 128, %s1055_s6, [#allocation3]  }
 0x497   :  { %845 = dma.done.wait [#allocation3], 128  }
 0x498   :  { %846 = vsyncadd [#allocation3], 4294967168 }
 0x499   :  { %729 = vsyncpa [#allocation3], 1 }

</bundles_post_ra>
